<compile_context>
chip_gen: v6e
topology: v6e:2x2x1
jax: 0.10.0
libtpu: 0.0.40
codegen_flags: <defaults>
</compile_context>

<pallas_src>
import jax
import jax.numpy as jnp
from jax.experimental import pallas as pl
from jax.experimental.pallas import tpu as pltpu

NODE_N = 196  # fixed by the module: GraphConvolution(..., node_n=196)


def _gcn_kernel(x_ref, att_ref, w_ref, b_ref, o_ref):
    """GCN for a tile of Bt batch elements, reassociated as (att @ x) @ W.

    x_ref  : (Bt, N, F)     VMEM  frame-major per batch element
    att_ref: (N, N)         VMEM  resident across grid steps (constant index_map)
    w_ref  : (F, D)         VMEM  resident
    b_ref  : (1, D)         VMEM  resident
    o_ref  : (N, Bt*D)      VMEM  lane-major over (batch, latent): batch i owns
                                  columns [i*D, (i+1)*D) -> dense, lane-aligned
                                  stores whenever D % 128 == 0.
    """
    att = att_ref[...]
    w = w_ref[...]
    bias = b_ref[...]                      # (1, D), broadcast over frames
    bt = x_ref.shape[0]
    d = w_ref.shape[1]
    for i in range(bt):                    # static unroll over the batch tile
        # Big contraction first: K = N = 196 on the MXU.
        s = jnp.dot(att, x_ref[i], preferred_element_type=jnp.float32)   # (N, F)
        # Cheap contraction: K = F (e.g. 12).
        out = jnp.dot(s, w, preferred_element_type=jnp.float32) + bias   # (N, D)
        o_ref[:, i * d:(i + 1) * d] = out.astype(o_ref.dtype)


def _pick_batch_tile(bs, nframes, input_feats, latent_dim, itemsize):
    """Pick a batch tile Bt (divisor of bs).

    Legality: the output block's last dim is Bt*latent_dim, which must be a
    multiple of 128 unless Bt == bs (full-dim block).  Goals: keep the
    double-buffered x+out blocks within a few MiB (v7x scoped VMEM), prefer
    >= 2 grid steps so the "parallel" batch axis can shard across v7x's two
    TensorCores, and bound the in-kernel unroll length.
    """
    per_batch_bytes = nframes * (input_feats + latent_dim) * itemsize
    budget = 8 * 1024 * 1024  # x+out block bytes per step (x2 below for dbl-buffer)
    divisors = [c for c in range(1, bs + 1) if bs % c == 0]
    legal = [c for c in divisors if c == bs or (c * latent_dim) % 128 == 0]
    for c in sorted(legal, reverse=True):
        if c <= 64 and 2 * c * per_batch_bytes <= budget and bs // c >= 2:
            return c
    for c in sorted(legal, reverse=True):
        if c <= 64 and 2 * c * per_batch_bytes <= budget:
            return c
    return bs  # last resort: single grid step over the whole batch


@jax.jit
def input_process_wgcn(x, weight, att, bias):
    """Forward of InputProcess_wGCN (data_rep in ['rot6d','xyz','hml_vec']).

    x      : (bs, njoints, nfeats, nframes)  with nframes == NODE_N
    weight : (input_feats, latent_dim)       input_feats = njoints * nfeats
    att    : (NODE_N, NODE_N)
    bias   : (latent_dim,)
    returns: (nframes, bs, latent_dim)
    """
    bs, njoints, nfeats, nframes = x.shape
    input_feats = njoints * nfeats
    latent_dim = weight.shape[1]

    if nframes != NODE_N or att.shape != (NODE_N, NODE_N):
        raise ValueError(
            f"InputProcess_wGCN requires nframes == node_n == {NODE_N}; "
            f"got nframes={nframes}, att.shape={att.shape}")
    if weight.shape[0] != input_feats:
        raise ValueError(f"weight.shape={weight.shape} incompatible with "
                         f"input_feats={input_feats}")

    # Frame-major layout (matches x.permute(0,3,1,2).reshape(bs, nframes, -1)).
    # TODO(synk): this permute is still a separate XLA pass over x in HBM; folding
    # it into the kernel needs an unaligned (F, N) -> (N, F) in-kernel transpose
    # (F is typically not a multiple of 8), which is left out for lowering safety.
    x_seq = jnp.transpose(x, (0, 3, 1, 2)).reshape(bs, nframes, input_feats)
    bias2d = bias.reshape(1, latent_dim)

    bt = _pick_batch_tile(bs, nframes, input_feats, latent_dim,
                          jnp.dtype(x.dtype).itemsize)
    grid = (bs // bt,)

    out2d = pl.pallas_call(
        _gcn_kernel,
        # 2D output: (frames, batch*latent). Splitting the trailing dim back to
        # (frames, batch, latent) below is a free, metadata-only reshape.
        out_shape=jax.ShapeDtypeStruct((nframes, bs * latent_dim), x.dtype),
        grid_spec=pltpu.PrefetchScalarGridSpec(
            num_scalar_prefetch=0,
            grid=grid,
            in_specs=[
                # x tile: Bt batch elements per grid step.
                pl.BlockSpec((bt, nframes, input_feats), lambda b: (b, 0, 0)),
                # att / W / bias: constant block index -> VMEM-resident, no re-DMA.
                pl.BlockSpec((nframes, nframes), lambda b: (0, 0)),
                pl.BlockSpec((input_feats, latent_dim), lambda b: (0, 0)),
                pl.BlockSpec((1, latent_dim), lambda b: (0, 0)),
            ],
            # Output written directly in final (frames, batch, latent) order:
            # no trailing transpose pass over the largest tensor.
            out_specs=pl.BlockSpec((nframes, bt * latent_dim), lambda b: (0, b)),
        ),
        compiler_params=pltpu.CompilerParams(
            dimension_semantics=("parallel",),
        ),
    )(x_seq, att, weight, bias2d)

    return out2d.reshape(nframes, bs, latent_dim)


def _reference(x, weight, att, bias):
    """Pure-JAX reference in the module's original association order."""
    bs, njoints, nfeats, nframes = x.shape
    x_seq = jnp.transpose(x, (0, 3, 1, 2)).reshape(bs, nframes, njoints * nfeats)
    support = jnp.einsum("bnf,fd->bnd", x_seq, weight)
    out = jnp.einsum("nm,bmd->bnd", att, support) + bias[None, None, :]
    return jnp.transpose(out, (1, 0, 2))


if __name__ == "__main__":
    key = jax.random.PRNGKey(0)

    # Small shapes consistent with the module: nframes must equal node_n = 196.
    bs, njoints, nfeats = 2, 4, 3
    nframes = NODE_N
    input_feats = njoints * nfeats
    latent_dim = 32

    kx, kw, ka, kb = jax.random.split(key, 4)
    x = jax.random.normal(kx, (bs, njoints, nfeats, nframes), dtype=jnp.float32)

    # Deterministic param init mimicking GraphConvolution.reset_parameters
    # (uniform in +/- 1/sqrt(out_features)).
    stdv = 1.0 / (latent_dim ** 0.5)
    weight = jax.random.uniform(kw, (input_feats, latent_dim),
                                minval=-stdv, maxval=stdv, dtype=jnp.float32)
    att = jax.random.uniform(ka, (NODE_N, NODE_N),
                             minval=-stdv, maxval=stdv, dtype=jnp.float32)
    bias = jax.random.uniform(kb, (latent_dim,),
                              minval=-stdv, maxval=stdv, dtype=jnp.float32)

    out = input_process_wgcn(x, weight, att, bias)
    out = jax.block_until_ready(out)

    ref = jax.block_until_ready(_reference(x, weight, att, bias))

    assert out.shape == (nframes, bs, latent_dim), out.shape
    # Matmul reassociation changes fp32 rounding slightly; 1e-4 is ample.
    assert jnp.allclose(out, ref, atol=1e-4, rtol=1e-4), \
        float(jnp.max(jnp.abs(out - ref)))

    print("KERNEL_OK")
</pallas_src>

<mosaic_0001>
module attributes {stable_mosaic.version = 11 : i64} {
  func.func @_gcn_kernel(%arg0: i32, %arg1: memref<2x196x12xf32, #tpu.memory_space<vmem>>, %arg2: memref<196x196xf32, #tpu.memory_space<vmem>>, %arg3: memref<12x32xf32, #tpu.memory_space<vmem>>, %arg4: memref<1x32xf32, #tpu.memory_space<vmem>>, %arg5: memref<196x64xf32, #tpu.memory_space<vmem>>) attributes {dimension_semantics = [#tpu.dimension_semantics<parallel>], iteration_bounds = array<i64: 1>, scalar_prefetch = 0 : i64, scratch_operands = 0 : i64, tpu.core_type = #tpu.core_type<tc>, window_params = [{transform_indices = @transform_0, window_bounds = array<i64: 2, 196, 12>}, {pipeline_mode = #tpu.pipeline_mode<synchronous>, transform_indices = @transform_1, window_bounds = array<i64: 196, 196>}, {pipeline_mode = #tpu.pipeline_mode<synchronous>, transform_indices = @transform_2, window_bounds = array<i64: 12, 32>}, {pipeline_mode = #tpu.pipeline_mode<synchronous>, transform_indices = @transform_3, window_bounds = array<i64: 1, 32>}, {transform_indices = @transform_4, window_bounds = array<i64: 196, 64>}]} {
    %c0 = arith.constant 0 : index
    %c0_0 = arith.constant 0 : index
    %0 = vector.load %arg2[%c0, %c0_0] : memref<196x196xf32, #tpu.memory_space<vmem>>, vector<196x196xf32>
    %c0_1 = arith.constant 0 : index
    %c0_2 = arith.constant 0 : index
    %1 = vector.load %arg3[%c0_1, %c0_2] : memref<12x32xf32, #tpu.memory_space<vmem>>, vector<12x32xf32>
    %c0_3 = arith.constant 0 : index
    %c0_4 = arith.constant 0 : index
    %2 = vector.load %arg4[%c0_3, %c0_4] : memref<1x32xf32, #tpu.memory_space<vmem>>, vector<1x32xf32>
    %c0_5 = arith.constant 0 : index
    %c0_6 = arith.constant 0 : index
    %c0_7 = arith.constant 0 : index
    %3 = vector.load %arg1[%c0_5, %c0_6, %c0_7] : memref<2x196x12xf32, #tpu.memory_space<vmem>>, vector<1x196x12xf32>
    %4 = vector.shape_cast %3 : vector<1x196x12xf32> to vector<196x12xf32>
    %cst = arith.constant dense<0.000000e+00> : vector<196x12xf32>
    %5 = tpu.matmul %0, %4, %cst {dimension_numbers = #tpu.dot_dimension_numbers<[1], [0], [0], [1], [0, 0, 1, 1], [], []>} : vector<196x196xf32>, vector<196x12xf32>, vector<196x12xf32> -> vector<196x12xf32>
    %cst_8 = arith.constant dense<0.000000e+00> : vector<196x32xf32>
    %6 = tpu.matmul %5, %1, %cst_8 {dimension_numbers = #tpu.dot_dimension_numbers<[1], [0], [0], [1], [0, 0, 1, 1], [], []>} : vector<196x12xf32>, vector<12x32xf32>, vector<196x32xf32> -> vector<196x32xf32>
    %7 = vector.broadcast %2 : vector<1x32xf32> to vector<196x32xf32>
    %8 = arith.addf %6, %7 : vector<196x32xf32>
    %c0_9 = arith.constant 0 : index
    %c0_10 = arith.constant 0 : index
    %9 = vector.load %arg5[%c0_9, %c0_10] : memref<196x64xf32, #tpu.memory_space<vmem>>, vector<196x32xf32>
    tpu.vector_store %arg5[%c0_9, %c0_10], %8 {strides = array<i32>} : memref<196x64xf32, #tpu.memory_space<vmem>>, vector<196x32xf32>,
    %c1 = arith.constant 1 : index
    %c0_11 = arith.constant 0 : index
    %c0_12 = arith.constant 0 : index
    %10 = vector.load %arg1[%c1, %c0_11, %c0_12] : memref<2x196x12xf32, #tpu.memory_space<vmem>>, vector<1x196x12xf32>
    %11 = vector.shape_cast %10 : vector<1x196x12xf32> to vector<196x12xf32>
    %cst_13 = arith.constant dense<0.000000e+00> : vector<196x12xf32>
    %12 = tpu.matmul %0, %11, %cst_13 {dimension_numbers = #tpu.dot_dimension_numbers<[1], [0], [0], [1], [0, 0, 1, 1], [], []>} : vector<196x196xf32>, vector<196x12xf32>, vector<196x12xf32> -> vector<196x12xf32>
    %cst_14 = arith.constant dense<0.000000e+00> : vector<196x32xf32>
    %13 = tpu.matmul %12, %1, %cst_14 {dimension_numbers = #tpu.dot_dimension_numbers<[1], [0], [0], [1], [0, 0, 1, 1], [], []>} : vector<196x12xf32>, vector<12x32xf32>, vector<196x32xf32> -> vector<196x32xf32>
    %14 = vector.broadcast %2 : vector<1x32xf32> to vector<196x32xf32>
    %15 = arith.addf %13, %14 : vector<196x32xf32>
    %c0_15 = arith.constant 0 : index
    %c32 = arith.constant 32 : index
    %16 = vector.load %arg5[%c0_15, %c32] : memref<196x64xf32, #tpu.memory_space<vmem>>, vector<196x32xf32>
    tpu.vector_store %arg5[%c0_15, %c32], %15 {strides = array<i32>} : memref<196x64xf32, #tpu.memory_space<vmem>>, vector<196x32xf32>,
    return
  }
  func.func @transform_0(%arg0: i32) -> (i32, i32, i32) {
    %c0_i32 = arith.constant 0 : i32
    %c0_i32_0 = arith.constant 0 : i32
    %c0_i32_1 = arith.constant 0 : i32
    return %arg0, %c0_i32, %c0_i32_0 : i32, i32, i32
  }
  func.func @transform_1(%arg0: i32) -> (i32, i32) {
    %c0_i32 = arith.constant 0 : i32
    %c0_i32_0 = arith.constant 0 : i32
    %c0_i32_1 = arith.constant 0 : i32
    return %c0_i32, %c0_i32_0 : i32, i32
  }
  func.func @transform_2(%arg0: i32) -> (i32, i32) {
    %c0_i32 = arith.constant 0 : i32
    %c0_i32_0 = arith.constant 0 : i32
    %c0_i32_1 = arith.constant 0 : i32
    return %c0_i32, %c0_i32_0 : i32, i32
  }
  func.func @transform_3(%arg0: i32) -> (i32, i32) {
    %c0_i32 = arith.constant 0 : i32
    %c0_i32_0 = arith.constant 0 : i32
    %c0_i32_1 = arith.constant 0 : i32
    return %c0_i32, %c0_i32_0 : i32, i32
  }
  func.func @transform_4(%arg0: i32) -> (i32, i32) {
    %c0_i32 = arith.constant 0 : i32
    %c0_i32_0 = arith.constant 0 : i32
    return %c0_i32, %arg0 : i32, i32
  }
}

</mosaic_0001>

<bundles_post_ra>
// kernel: input_process_wgcn.1
= control target key start
LH: loop header
LB: loop body
LE: loop exit
PB: predicated region body
PF: predicated region fallthrough
CT: control target
= control target key end

     0   :  { %v1631_v0 = vmov 0.0   ;;  %vm95_vm0 = vcmask 556032   ;;  %vm171_vm1 = vcmask 1043456   ;;  %vm1632_vm2 = vmmov 0   ;;  %s1633_s21 = smov 32   ;;  %s2714_s0 = inlined_call_operand.vmem [shape: f32[2,196,12], index: 0, kind: input, shape index: {}]   ;;  %s2715_s1 = inlined_call_operand.vmem [shape: f32[196,196], index: 1, kind: input, shape index: {}]   ;;  %s2716_s2 = inlined_call_operand.vmem [shape: f32[12,32], index: 2, kind: input, shape index: {}]   ;;  %s2717_s3 = inlined_call_operand.vmem [shape: f32[1,32], index: 3, kind: input, shape index: {}]   ;;  %s2718_s4 = inlined_call_operand.vmem [shape: f32[196,64], index: 4, kind: output, shape index: {}]  }
   0x1   :  { %175 = vmatprep.subr.mxu0 %v1631_v0  ;;  %v85_v1 = vld [vmem:[%s2714_s0 + $0x78] sm:$0xff]  ;;  %v84_v2 = vld [vmem:[%s2714_s0 + $0x70] sm:$0xff]  ;;  %1466 = vmatprep.subr.mxu1 %v1631_v0  ;;  %v83_v3 = vld [vmem:[%s2714_s0 + $0x68] sm:$0xff]  ;;  %vm371_vm3 = vcmask 97280   ;;  %vm640_vm4 = vcmask 261120   ;;  %vm665_vm5 = vcmask 257024  }
   0x2   :  { %176 = vmatpush1.msra.mxu0 %v85_v1  ;;  %v82_v4 = vld [vmem:[%s2714_s0 + $0x60] sm:$0xff]  ;;  %v81_v5 = vld [vmem:[%s2714_s0 + $0x58] sm:$0xff]  ;;  %v80_v6 = vld [vmem:[%s2714_s0 + $0x50] sm:$0xff]  ;;  %1470 = vmatprep.mubr.msk.f32.mxu1 %vm1632_vm2, %v1631_v0  ;;  %vm1251_vm6 = vcmask 523520   ;;  %vm1276_vm7 = vcmask 519424  }
   0x3   :  { %177 = vmatprep.subr.mxu0 %v1631_v0  ;;  %v1686_v7 = vld [vmem:[%s2715_s1 + $0x8] sm:$0xff]  ;;  %v78_v9 = vld [vmem:[%s2714_s0 + $0x40] sm:$0xff]  ;;  %v77_v10 = vld [vmem:[%s2714_s0 + $0x38] sm:$0xff] }
   0x4   :  { %178 = vmatpush1.msra.mxu0 %v84_v2  ;;  %1283 = vmatprep.mubr.msk.f32.mxu0 %vm95_vm0, %v1686_v7  ;;  %v79_v8 = vld [vmem:[%s2714_s0 + $0x48] sm:$0xff]  ;;  %v76_v11 = vld [vmem:[%s2714_s0 + $0x30] sm:$0xff]  ;;  %v74_v13 = vld [vmem:[%s2714_s0 + $0x20] sm:$0xff] }
   0x5   :  { %179 = vmatprep.subr.mxu0 %v1631_v0  ;;  %v75_v12 = vld [vmem:[%s2714_s0 + $0x28] sm:$0xff]  ;;  %v73_v14 = vld [vmem:[%s2714_s0 + $0x18] sm:$0xff]  ;;  %v72_v15 = vld [vmem:[%s2714_s0 + $0x10] sm:$0xff] }
   0x6   :  { %180 = vmatpush1.msra.mxu0 %v83_v3  ;;  %v1725_v16 = vld [vmem:[%s2716_s2 + $0x8] sm:$0xf]  ;;  %v1730_v17 = vld [vmem:[%s2716_s2] sm:$0xff]  ;;  %v93_v21 = vld [vmem:[%s2714_s0 + $0xb8] sm:$0xff] }
   0x7   :  { %181 = vmatprep.subr.mxu0 %v1631_v0  ;;  %v71_v18 = vld [vmem:[%s2714_s0 + $0x8] sm:$0xff]  ;;  %1467 = vmatpush3.msk.msra.mxu1 %vm171_vm1, %v1725_v16  ;;  %v70_v19 = vld [vmem:[%s2714_s0] sm:$0xff]  ;;  %v92_v22 = vld [vmem:[%s2714_s0 + $0xb0] sm:$0xff] }
   0x8   :  { %182 = vmatpush1.msra.mxu0 %v82_v4  ;;  %1468 = vmatprep.subr.mxu1 %v1631_v0  ;;  %v94_v20 = vld [vmem:[%s2714_s0 + $0xc0] sm:$0xf]  ;;  %v91_v23 = vld [vmem:[%s2714_s0 + $0xa8] sm:$0xff]  ;;  %v89_v25 = vld [vmem:[%s2714_s0 + $0x98] sm:$0xff] }
   0x9   :  { %183 = vmatprep.subr.mxu0 %v1631_v0  ;;  %1469 = vmatpush3.msra.mxu1 %v1730_v17  ;;  %v90_v24 = vld [vmem:[%s2714_s0 + $0xa0] sm:$0xff]  ;;  %v88_v26 = vld [vmem:[%s2714_s0 + $0x90] sm:$0xff]  ;;  %v87_v27 = vld [vmem:[%s2714_s0 + $0x88] sm:$0xff] }
   0xa   :  { %184 = vmatpush1.msra.mxu0 %v81_v5  ;;  %696 = vmatprep.subr.mxu1 %v1631_v0  ;;  %v86_v28 = vld [vmem:[%s2714_s0 + $0x80] sm:$0xff]  ;;  %v1791_v30 = vld [vmem:[%s2715_s1 + $0x18] sm:$0xff]  ;;  %v1800_v31 = vld [vmem:[%s2715_s1 + $0x10] sm:$0xff] }
   0xb   :  { %185 = vmatprep.subr.mxu0 %v1631_v0  ;;  %v1785_v29 = vld [vmem:[%s2715_s1] sm:$0xff]  ;;  %v1807_v32 = vld [vmem:[%s2715_s1 + $0x28] sm:$0xff]  ;;  %v1822_v34 = vld [vmem:[%s2715_s1 + $0x38] sm:$0xff] }
   0xc   :  { %186 = vmatpush1.msra.mxu0 %v80_v6  ;;  %v1817_v33 = vld [vmem:[%s2715_s1 + $0x20] sm:$0xff]  ;;  %v1830_v35 = vld [vmem:[%s2715_s1 + $0x30] sm:$0xff]  ;;  %v1835_v36 = vld [vmem:[%s2715_s1 + $0x48] sm:$0xff] }
   0xd   :  { %187 = vmatprep.subr.mxu0 %v1631_v0  ;;  %v1843_v37 = vld [vmem:[%s2715_s1 + $0x40] sm:$0xff]  ;;  %v1848_v38 = vld [vmem:[%s2715_s1 + $0x58] sm:$0xff]  ;;  %v1856_v39 = vld [vmem:[%s2715_s1 + $0x50] sm:$0xff] }
   0xe   :  { %188 = vmatpush1.msra.mxu0 %v79_v8  ;;  %v1861_v40 = vld [vmem:[%s2715_s1 + $0x68] sm:$0xff]  ;;  %v1869_v41 = vld [vmem:[%s2715_s1 + $0x60] sm:$0xff]  ;;  %v1874_v42 = vld [vmem:[%s2715_s1 + $0x78] sm:$0xff] }
   0xf   :  { %189 = vmatprep.subr.mxu0 %v1631_v0  ;;  %v1882_v43 = vld [vmem:[%s2715_s1 + $0x70] sm:$0xff]  ;;  %v1887_v44 = vld [vmem:[%s2715_s1 + $0x88] sm:$0xff]  ;;  %v1895_v45 = vld [vmem:[%s2715_s1 + $0x80] sm:$0xff] }
  0x10   :  { %190 = vmatpush1.msra.mxu0 %v78_v9  ;;  %v1900_v46 = vld [vmem:[%s2715_s1 + $0x98] sm:$0xff]  ;;  %v1908_v47 = vld [vmem:[%s2715_s1 + $0x90] sm:$0xff]  ;;  %v1913_v48 = vld [vmem:[%s2715_s1 + $0xa8] sm:$0xff] }
  0x11   :  { %191 = vmatprep.subr.mxu0 %v1631_v0  ;;  %v1921_v49 = vld [vmem:[%s2715_s1 + $0xa0] sm:$0xff]  ;;  %v1926_v50 = vld [vmem:[%s2715_s1 + $0xb8] sm:$0xff]  ;;  %v1934_v51 = vld [vmem:[%s2715_s1 + $0xb0] sm:$0xff] }
  0x12   :  { %192 = vmatpush1.msra.mxu0 %v77_v10  ;;  %v1939_v52 = vld [vmem:[%s2715_s1 + $0xc8] sm:$0xff]  ;;  %v1947_v53 = vld [vmem:[%s2715_s1 + $0xc0] sm:$0xff]  ;;  %v1952_v54 = vld [vmem:[%s2715_s1 + $0xd8] sm:$0xff] }
  0x13   :  { %193 = vmatprep.subr.mxu0 %v1631_v0  ;;  %v1960_v55 = vld [vmem:[%s2715_s1 + $0xd0] sm:$0xff]  ;;  %v1965_v56 = vld [vmem:[%s2715_s1 + $0xe8] sm:$0xff]  ;;  %v1973_v57 = vld [vmem:[%s2715_s1 + $0xe0] sm:$0xff] }
  0x14   :  { %194 = vmatpush1.msra.mxu0 %v76_v11  ;;  %v1978_v58 = vld [vmem:[%s2715_s1 + $0xf8] sm:$0xff]  ;;  %v1986_v59 = vld [vmem:[%s2715_s1 + $0xf0] sm:$0xff]  ;;  %v1991_v60 = vld [vmem:[%s2715_s1 + $0x108] sm:$0xff] }
  0x15   :  { %195 = vmatprep.subr.mxu0 %v1631_v0  ;;  %v1999_v61 = vld [vmem:[%s2715_s1 + $0x100] sm:$0xff]  ;;  %v2004_v62 = vld [vmem:[%s2715_s1 + $0x118] sm:$0xff]  ;;  %v2014_v63 = vld [vmem:[%s2715_s1 + $0x110] sm:$0xff] }
  0x16   :  { %196 = vmatpush1.msra.mxu0 %v75_v12  ;;  %v2019_v1 = vld [vmem:[%s2715_s1 + $0x128] sm:$0xff]  ;;  %v2027_v2 = vld [vmem:[%s2715_s1 + $0x120] sm:$0xff]  ;;  %v2032_v3 = vld [vmem:[%s2715_s1 + $0x138] sm:$0xff] }
  0x17   :  { %197 = vmatprep.subr.mxu0 %v1631_v0  ;;  %v2040_v4 = vld [vmem:[%s2715_s1 + $0x130] sm:$0xff]  ;;  %v2045_v5 = vld [vmem:[%s2715_s1 + $0x148] sm:$0xff]  ;;  %v2053_v6 = vld [vmem:[%s2715_s1 + $0x140] sm:$0xff] }
  0x18   :  { %198 = vmatpush1.msra.mxu0 %v74_v13  ;;  %v2058_v8 = vld [vmem:[%s2715_s1 + $0x158] sm:$0xff]  ;;  %v2066_v9 = vld [vmem:[%s2715_s1 + $0x150] sm:$0xff]  ;;  %v2071_v10 = vld [vmem:[%s2715_s1 + $0x168] sm:$0xff] }
  0x19   :  { %199 = vmatprep.subr.mxu0 %v1631_v0  ;;  %v2079_v11 = vld [vmem:[%s2715_s1 + $0x160] sm:$0xff]  ;;  %v2084_v12 = vld [vmem:[%s2715_s1 + $0x178] sm:$0xff]  ;;  %v2092_v13 = vld [vmem:[%s2715_s1 + $0x170] sm:$0xff] }
  0x1a   :  { %200 = vmatpush1.msra.mxu0 %v73_v14  ;;  %v2097_v14 = vld [vmem:[%s2715_s1 + $0x188] sm:$0xf] }
  0x1b   :  { %201 = vmatprep.subr.mxu0 %v1631_v0 }
  0x1c   :  { %202 = vmatpush1.msra.mxu0 %v72_v15  ;;  %v2105_v15 = vld [vmem:[%s2715_s1 + $0x180] sm:$0xf] }
  0x1d   :  { %203 = vmatprep.subr.mxu0 %v1631_v0 }
  0x1e   :  { %204 = vmatpush1.msra.mxu0 %v71_v18  ;;  %v1350_v18 = vld [vmem:[%s2714_s0 + $0x140] sm:$0xff] }
  0x1f   :  { %205 = vmatprep.subr.mxu0 %v1631_v0 }
  0x20   :  { %206 = vmatpush1.msra.mxu0 %v70_v19 }
  0x21   :  { %221 = vmatprep.subr.mxu0 %v1631_v0 }
  0x22   :  { %1282 = vmatpush2.msk.msra.mxu0 %vm171_vm1, %v94_v20  ;;  %v1349_v20 = vld [vmem:[%s2714_s0 + $0x138] sm:$0xff] }
  0x23   :  { %223 = vmatprep.subr.mxu0 %v1631_v0 }
  0x24   :  { %224 = vmatpush2.msra.mxu0 %v93_v21 }
  0x25   :  { %225 = vmatprep.subr.mxu0 %v1631_v0 }
  0x26   :  { %226 = vmatpush2.msra.mxu0 %v92_v22  ;;  %v1348_v22 = vld [vmem:[%s2714_s0 + $0x130] sm:$0xff] }
  0x27   :  { %227 = vmatprep.subr.mxu0 %v1631_v0 }
  0x28   :  { %228 = vmatpush2.msra.mxu0 %v91_v23 }
  0x29   :  { %229 = vmatprep.subr.mxu0 %v1631_v0 }
  0x2a   :  { %230 = vmatpush2.msra.mxu0 %v90_v24  ;;  %v1347_v24 = vld [vmem:[%s2714_s0 + $0x128] sm:$0xff] }
  0x2b   :  { %231 = vmatprep.subr.mxu0 %v1631_v0 }
  0x2c   :  { %232 = vmatpush2.msra.mxu0 %v89_v25 }
  0x2d   :  { %233 = vmatprep.subr.mxu0 %v1631_v0 }
  0x2e   :  { %234 = vmatpush2.msra.mxu0 %v88_v26  ;;  %v1346_v26 = vld [vmem:[%s2714_s0 + $0x120] sm:$0xff] }
  0x2f   :  { %235 = vmatprep.subr.mxu0 %v1631_v0 }
  0x30   :  { %236 = vmatpush2.msra.mxu0 %v87_v27 }
  0x31   :  { %237 = vmatprep.subr.mxu0 %v1631_v0 }
  0x32   :  { %238 = vmatpush2.msra.mxu0 %v86_v28  ;;  %v1345_v28 = vld [vmem:[%s2714_s0 + $0x118] sm:$0xff] }
  0x33   :  { %240 = vmatmul.mubr.f32.vlgmr.msra.gmra.mxu0 %v1785_v29  ;;  %1545 = vmatprep.subr.mxu0 %v1631_v0 }
  0x34   :  { %1284 = vmatprep.mubr.msk.f32.mxu0 %vm95_vm0, %v1791_v30  ;;  %1546 = vmatpush3.msk.msra.mxu0 %vm171_vm1, %v1725_v16 }
  0x35   :  { %1547 = vmatprep.subr.mxu0 %v1631_v0 }
  0x36   :  { %1548 = vmatpush3.msra.mxu0 %v1730_v17 }
  0x37   :  { %245 = vmatmul.mubr.f32.gmra.mxu0 %v1800_v31 }
  0x38   :  { %1285 = vmatprep.mubr.msk.f32.mxu0 %vm95_vm0, %v1807_v32 }
  0x3b   :  { %250 = vmatmul.mubr.f32.gmra.mxu0 %v1817_v33 }
  0x3c   :  { %1286 = vmatprep.mubr.msk.f32.mxu0 %vm95_vm0, %v1822_v34 }
  0x3f   :  { %255 = vmatmul.mubr.f32.gmra.mxu0 %v1830_v35 }
  0x40   :  { %1287 = vmatprep.mubr.msk.f32.mxu0 %vm95_vm0, %v1835_v36 }
  0x43   :  { %260 = vmatmul.mubr.f32.gmra.mxu0 %v1843_v37 }
  0x44   :  { %1288 = vmatprep.mubr.msk.f32.mxu0 %vm95_vm0, %v1848_v38 }
  0x47   :  { %265 = vmatmul.mubr.f32.gmra.mxu0 %v1856_v39 }
  0x48   :  { %1289 = vmatprep.mubr.msk.f32.mxu0 %vm95_vm0, %v1861_v40 }
  0x4b   :  { %270 = vmatmul.mubr.f32.gmra.mxu0 %v1869_v41 }
  0x4c   :  { %1290 = vmatprep.mubr.msk.f32.mxu0 %vm95_vm0, %v1874_v42 }
  0x4f   :  { %275 = vmatmul.mubr.f32.gmra.mxu0 %v1882_v43 }
  0x50   :  { %1291 = vmatprep.mubr.msk.f32.mxu0 %vm95_vm0, %v1887_v44 }
  0x53   :  { %280 = vmatmul.mubr.f32.gmra.mxu0 %v1895_v45 }
  0x54   :  { %1292 = vmatprep.mubr.msk.f32.mxu0 %vm95_vm0, %v1900_v46 }
  0x57   :  { %285 = vmatmul.mubr.f32.gmra.mxu0 %v1908_v47 }
  0x58   :  { %1293 = vmatprep.mubr.msk.f32.mxu0 %vm95_vm0, %v1913_v48 }
  0x5b   :  { %290 = vmatmul.mubr.f32.gmra.mxu0 %v1921_v49 }
  0x5c   :  { %1294 = vmatprep.mubr.msk.f32.mxu0 %vm95_vm0, %v1926_v50 }
  0x5f   :  { %295 = vmatmul.mubr.f32.gmra.mxu0 %v1934_v51 }
  0x60   :  { %1295 = vmatprep.mubr.msk.f32.mxu0 %vm95_vm0, %v1939_v52 }
  0x63   :  { %300 = vmatmul.mubr.f32.gmra.mxu0 %v1947_v53 }
  0x64   :  { %1296 = vmatprep.mubr.msk.f32.mxu0 %vm95_vm0, %v1952_v54 }
  0x67   :  { %305 = vmatmul.mubr.f32.gmra.mxu0 %v1960_v55 }
  0x68   :  { %1297 = vmatprep.mubr.msk.f32.mxu0 %vm95_vm0, %v1965_v56 }
  0x6b   :  { %310 = vmatmul.mubr.f32.gmra.mxu0 %v1973_v57 }
  0x6c   :  { %1298 = vmatprep.mubr.msk.f32.mxu0 %vm95_vm0, %v1978_v58 }
  0x6f   :  { %315 = vmatmul.mubr.f32.gmra.mxu0 %v1986_v59 }
  0x70   :  { %1299 = vmatprep.mubr.msk.f32.mxu0 %vm95_vm0, %v1991_v60 }
  0x73   :  { %320 = vmatmul.mubr.f32.gmra.mxu0 %v1999_v61 }
  0x74   :  { %1300 = vmatprep.mubr.msk.f32.mxu0 %vm95_vm0, %v2004_v62 }
  0x77   :  { %325 = vmatmul.mubr.f32.gmra.mxu0 %v2014_v63 }
  0x78   :  { %1301 = vmatprep.mubr.msk.f32.mxu0 %vm95_vm0, %v2019_v1 }
  0x7b   :  { %330 = vmatmul.mubr.f32.gmra.mxu0 %v2027_v2 }
  0x7c   :  { %1302 = vmatprep.mubr.msk.f32.mxu0 %vm95_vm0, %v2032_v3 }
  0x7f   :  { %335 = vmatmul.mubr.f32.gmra.mxu0 %v2040_v4 }
  0x80   :  { %1303 = vmatprep.mubr.msk.f32.mxu0 %vm95_vm0, %v2045_v5 }
  0x83   :  { %340 = vmatmul.mubr.f32.gmra.mxu0 %v2053_v6 }
  0x84   :  { %1304 = vmatprep.mubr.msk.f32.mxu0 %vm95_vm0, %v2058_v8 }
  0x87   :  { %345 = vmatmul.mubr.f32.gmra.mxu0 %v2066_v9 }
  0x88   :  { %1305 = vmatprep.mubr.msk.f32.mxu0 %vm95_vm0, %v2071_v10 }
  0x8b   :  { %350 = vmatmul.mubr.f32.gmra.mxu0 %v2079_v11 }
  0x8c   :  { %1306 = vmatprep.mubr.msk.f32.mxu0 %vm95_vm0, %v2084_v12 }
  0x8f   :  { %355 = vmatmul.mubr.f32.gmra.mxu0 %v2092_v13 }
  0x90   :  { %1307 = vmatprep.mubr.msk.f32.mxu0 %vm95_vm0, %v2097_v14 }
  0x93   :  { %360 = vmatmul.mubr.f32.gmra.mxu0 %v2105_v15 }
  0x94   :  { %1549 = vmatprep.mubr.msk.f32.mxu0 %vm1632_vm2, %v1631_v0 }
  0xf3   :  { %v241_v19 = vpop.f32.mrf.mxu0 }
  0xf4   :  { %1471 = vmatmul.mubr.msk.f32.vlgmr.msra.gmra.mxu1 %vm371_vm3, %v241_v19  ;;  %v1344_v19 = vld [vmem:[%s2714_s0 + $0x110] sm:$0xff] }
  0xf5   :  { %697 = vmatpush1.msra.mxu1 %v1350_v18  ;;  %v243_v21 = vpop.f32.mrf.mxu0  ;;  %1473 = vmatprep.mubr.msk.f32.mxu1 %vm1632_vm2, %v1631_v0 }
  0xf6   :  { %698 = vmatprep.subr.mxu1 %v1631_v0  ;;  %v1343_v21 = vld [vmem:[%s2714_s0 + $0x108] sm:$0xff] }
  0xf7   :  { %v246_v23 = vpop.f32.mrf.mxu0  ;;  %699 = vmatpush1.msra.mxu1 %v1349_v20 }
  0xf8   :  { %1474 = vmatmul.mubr.msk.f32.gmra.mxu1 %vm371_vm3, %v246_v23  ;;  %700 = vmatprep.subr.mxu1 %v1631_v0  ;;  %v1342_v23 = vld [vmem:[%s2714_s0 + $0x100] sm:$0xff] }
  0xf9   :  { %v248_v25 = vpop.f32.mrf.mxu0  ;;  %1476 = vmatprep.mubr.msk.f32.mxu1 %vm1632_vm2, %v1631_v0  ;;  %701 = vmatpush1.msra.mxu1 %v1348_v22 }
  0xfa   :  { %702 = vmatprep.subr.mxu1 %v1631_v0  ;;  %v1341_v25 = vld [vmem:[%s2714_s0 + $0xf8] sm:$0xff] }
  0xfb   :  { %v251_v27 = vpop.f32.mrf.mxu0  ;;  %703 = vmatpush1.msra.mxu1 %v1347_v24 }
  0xfc   :  { %1477 = vmatmul.mubr.msk.f32.gmra.mxu1 %vm371_vm3, %v251_v27  ;;  %704 = vmatprep.subr.mxu1 %v1631_v0  ;;  %v1340_v27 = vld [vmem:[%s2714_s0 + $0xf0] sm:$0xff] }
  0xfd   :  { %v253_v18 = vpop.f32.mrf.mxu0  ;;  %1479 = vmatprep.mubr.msk.f32.mxu1 %vm1632_vm2, %v1631_v0  ;;  %705 = vmatpush1.msra.mxu1 %v1346_v26 }
  0xfe   :  { %706 = vmatprep.subr.mxu1 %v1631_v0  ;;  %v1339_v18 = vld [vmem:[%s2714_s0 + $0xe8] sm:$0xff] }
  0xff   :  { %v256_v20 = vpop.f32.mrf.mxu0  ;;  %707 = vmatpush1.msra.mxu1 %v1345_v28 }
 0x100   :  { %1480 = vmatmul.mubr.msk.f32.gmra.mxu1 %vm371_vm3, %v256_v20  ;;  %708 = vmatprep.subr.mxu1 %v1631_v0  ;;  %v1338_v20 = vld [vmem:[%s2714_s0 + $0xe0] sm:$0xff] }
 0x101   :  { %v258_v22 = vpop.f32.mrf.mxu0  ;;  %1482 = vmatprep.mubr.msk.f32.mxu1 %vm1632_vm2, %v1631_v0  ;;  %709 = vmatpush1.msra.mxu1 %v1344_v19 }
 0x102   :  { %710 = vmatprep.subr.mxu1 %v1631_v0  ;;  %v1337_v22 = vld [vmem:[%s2714_s0 + $0xd8] sm:$0xff] }
 0x103   :  { %v261_v24 = vpop.f32.mrf.mxu0  ;;  %711 = vmatpush1.msra.mxu1 %v1343_v21 }
 0x104   :  { %1483 = vmatmul.mubr.msk.f32.gmra.mxu1 %vm371_vm3, %v261_v24  ;;  %712 = vmatprep.subr.mxu1 %v1631_v0  ;;  %v1336_v24 = vld [vmem:[%s2714_s0 + $0xd0] sm:$0xff] }
 0x105   :  { %v263_v26 = vpop.f32.mrf.mxu0  ;;  %1485 = vmatprep.mubr.msk.f32.mxu1 %vm1632_vm2, %v1631_v0  ;;  %713 = vmatpush1.msra.mxu1 %v1342_v23 }
 0x106   :  { %714 = vmatprep.subr.mxu1 %v1631_v0  ;;  %v1335_v26 = vld [vmem:[%s2714_s0 + $0xc8] sm:$0xff] }
 0x107   :  { %v266_v28 = vpop.f32.mrf.mxu0  ;;  %715 = vmatpush1.msra.mxu1 %v1341_v25 }
 0x108   :  { %1486 = vmatmul.mubr.msk.f32.gmra.mxu1 %vm371_vm3, %v266_v28  ;;  %716 = vmatprep.subr.mxu1 %v1631_v0  ;;  %v1359_v28 = vld [vmem:[%s2714_s0 + $0x188] sm:$0xf] }
 0x109   :  { %v268_v19 = vpop.f32.mrf.mxu0  ;;  %1488 = vmatprep.mubr.msk.f32.mxu1 %vm1632_vm2, %v1631_v0  ;;  %717 = vmatpush1.msra.mxu1 %v1340_v27 }
 0x10a   :  { %718 = vmatprep.subr.mxu1 %v1631_v0  ;;  %v1358_v19 = vld [vmem:[%s2714_s0 + $0x180] sm:$0xff] }
 0x10b   :  { %v271_v21 = vpop.f32.mrf.mxu0  ;;  %719 = vmatpush1.msra.mxu1 %v1339_v18 }
 0x10c   :  { %1489 = vmatmul.mubr.msk.f32.gmra.mxu1 %vm371_vm3, %v271_v21  ;;  %720 = vmatprep.subr.mxu1 %v1631_v0  ;;  %v1357_v21 = vld [vmem:[%s2714_s0 + $0x178] sm:$0xff] }
 0x10d   :  { %v273_v23 = vpop.f32.mrf.mxu0  ;;  %1491 = vmatprep.mubr.msk.f32.mxu1 %vm1632_vm2, %v1631_v0  ;;  %721 = vmatpush1.msra.mxu1 %v1338_v20 }
 0x10e   :  { %722 = vmatprep.subr.mxu1 %v1631_v0  ;;  %v1356_v23 = vld [vmem:[%s2714_s0 + $0x170] sm:$0xff] }
 0x10f   :  { %v276_v25 = vpop.f32.mrf.mxu0  ;;  %723 = vmatpush1.msra.mxu1 %v1337_v22 }
 0x110   :  { %1492 = vmatmul.mubr.msk.f32.gmra.mxu1 %vm371_vm3, %v276_v25  ;;  %724 = vmatprep.subr.mxu1 %v1631_v0  ;;  %v1355_v25 = vld [vmem:[%s2714_s0 + $0x168] sm:$0xff] }
 0x111   :  { %v278_v27 = vpop.f32.mrf.mxu0  ;;  %1494 = vmatprep.mubr.msk.f32.mxu1 %vm1632_vm2, %v1631_v0  ;;  %725 = vmatpush1.msra.mxu1 %v1336_v24 }
 0x112   :  { %726 = vmatprep.subr.mxu1 %v1631_v0  ;;  %v1354_v27 = vld [vmem:[%s2714_s0 + $0x160] sm:$0xff] }
 0x113   :  { %v281_v18 = vpop.f32.mrf.mxu0  ;;  %727 = vmatpush1.msra.mxu1 %v1335_v26 }
 0x114   :  { %1495 = vmatmul.mubr.msk.f32.gmra.mxu1 %vm371_vm3, %v281_v18  ;;  %742 = vmatprep.subr.mxu1 %v1631_v0  ;;  %v1353_v18 = vld [vmem:[%s2714_s0 + $0x158] sm:$0xff] }
 0x115   :  { %v283_v20 = vpop.f32.mrf.mxu0  ;;  %1497 = vmatprep.mubr.msk.f32.mxu1 %vm1632_vm2, %v1631_v0  ;;  %1360 = vmatpush2.msk.msra.mxu1 %vm171_vm1, %v1359_v28 }
 0x116   :  { %744 = vmatprep.subr.mxu1 %v1631_v0  ;;  %v1352_v20 = vld [vmem:[%s2714_s0 + $0x150] sm:$0xff] }
 0x117   :  { %v286_v22 = vpop.f32.mrf.mxu0  ;;  %745 = vmatpush2.msra.mxu1 %v1358_v19 }
 0x118   :  { %1498 = vmatmul.mubr.msk.f32.gmra.mxu1 %vm371_vm3, %v286_v22  ;;  %746 = vmatprep.subr.mxu1 %v1631_v0  ;;  %v1351_v22 = vld [vmem:[%s2714_s0 + $0x148] sm:$0xff] }
 0x119   :  { %v288_v24 = vpop.f32.mrf.mxu0  ;;  %1500 = vmatprep.mubr.msk.f32.mxu1 %vm1632_vm2, %v1631_v0  ;;  %747 = vmatpush2.msra.mxu1 %v1357_v21 }
 0x11a   :  { %748 = vmatprep.subr.mxu1 %v1631_v0 }
 0x11b   :  { %v291_v26 = vpop.f32.mrf.mxu0  ;;  %749 = vmatpush2.msra.mxu1 %v1356_v23 }
 0x11c   :  { %1501 = vmatmul.mubr.msk.f32.gmra.mxu1 %vm371_vm3, %v291_v26  ;;  %750 = vmatprep.subr.mxu1 %v1631_v0 }
 0x11d   :  { %v293_v28 = vpop.f32.mrf.mxu0  ;;  %1503 = vmatprep.mubr.msk.f32.mxu1 %vm1632_vm2, %v1631_v0  ;;  %751 = vmatpush2.msra.mxu1 %v1355_v25 }
 0x11e   :  { %752 = vmatprep.subr.mxu1 %v1631_v0 }
 0x11f   :  { %v296_v19 = vpop.f32.mrf.mxu0  ;;  %753 = vmatpush2.msra.mxu1 %v1354_v27 }
 0x120   :  { %1504 = vmatmul.mubr.msk.f32.gmra.mxu1 %vm371_vm3, %v296_v19  ;;  %754 = vmatprep.subr.mxu1 %v1631_v0 }
 0x121   :  { %v298_v21 = vpop.f32.mrf.mxu0  ;;  %1506 = vmatprep.mubr.msk.f32.mxu1 %vm1632_vm2, %v1631_v0  ;;  %755 = vmatpush2.msra.mxu1 %v1353_v18 }
 0x122   :  { %756 = vmatprep.subr.mxu1 %v1631_v0 }
 0x123   :  { %v301_v23 = vpop.f32.mrf.mxu0  ;;  %757 = vmatpush2.msra.mxu1 %v1352_v20 }
 0x124   :  { %1507 = vmatmul.mubr.msk.f32.gmra.mxu1 %vm371_vm3, %v301_v23  ;;  %758 = vmatprep.subr.mxu1 %v1631_v0 }
 0x125   :  { %v303_v24 = vpop.f32.mrf.mxu0  ;;  %1509 = vmatprep.mubr.msk.f32.mxu1 %vm1632_vm2, %v1631_v0  ;;  %759 = vmatpush2.msra.mxu1 %v1351_v22 }
 0x126   :  { %1624 = vmatprep.subr.mxu1 %v1631_v0 }
 0x127   :  { %v306_v25 = vpop.f32.mrf.mxu0 }
 0x128   :  { %1510 = vmatmul.mubr.msk.f32.gmra.mxu1 %vm371_vm3, %v306_v25 }
 0x129   :  { %v308_v26 = vpop.f32.mrf.mxu0  ;;  %1512 = vmatprep.mubr.msk.f32.mxu1 %vm1632_vm2, %v1631_v0 }
 0x12b   :  { %v311_v27 = vpop.f32.mrf.mxu0 }
 0x12c   :  { %1513 = vmatmul.mubr.msk.f32.gmra.mxu1 %vm371_vm3, %v311_v27 }
 0x12d   :  { %v313_v28 = vpop.f32.mrf.mxu0  ;;  %1515 = vmatprep.mubr.msk.f32.mxu1 %vm1632_vm2, %v1631_v0 }
 0x12f   :  { %v316_v18 = vpop.f32.mrf.mxu0 }
 0x130   :  { %1516 = vmatmul.mubr.msk.f32.gmra.mxu1 %vm371_vm3, %v316_v18 }
 0x131   :  { %v318_v19 = vpop.f32.mrf.mxu0  ;;  %1518 = vmatprep.mubr.msk.f32.mxu1 %vm1632_vm2, %v1631_v0 }
 0x133   :  { %v321_v20 = vpop.f32.mrf.mxu0 }
 0x134   :  { %1519 = vmatmul.mubr.msk.f32.gmra.mxu1 %vm371_vm3, %v321_v20 }
 0x135   :  { %v323_v21 = vpop.f32.mrf.mxu0  ;;  %1521 = vmatprep.mubr.msk.f32.mxu1 %vm1632_vm2, %v1631_v0 }
 0x137   :  { %v326_v22 = vpop.f32.mrf.mxu0 }
 0x138   :  { %1522 = vmatmul.mubr.msk.f32.gmra.mxu1 %vm371_vm3, %v326_v22 }
 0x139   :  { %v328_v23 = vpop.f32.mrf.mxu0  ;;  %1524 = vmatprep.mubr.msk.f32.mxu1 %vm1632_vm2, %v1631_v0 }
 0x13b   :  { %v331_v24 = vpop.f32.mrf.mxu0 }
 0x13c   :  { %1525 = vmatmul.mubr.msk.f32.gmra.mxu1 %vm371_vm3, %v331_v24 }
 0x13d   :  { %v333_v25 = vpop.f32.mrf.mxu0  ;;  %1527 = vmatprep.mubr.msk.f32.mxu1 %vm1632_vm2, %v1631_v0 }
 0x13f   :  { %v336_v26 = vpop.f32.mrf.mxu0 }
 0x140   :  { %1528 = vmatmul.mubr.msk.f32.gmra.mxu1 %vm371_vm3, %v336_v26 }
 0x141   :  { %v338_v27 = vpop.f32.mrf.mxu0  ;;  %1530 = vmatprep.mubr.msk.f32.mxu1 %vm1632_vm2, %v1631_v0 }
 0x143   :  { %v341_v28 = vpop.f32.mrf.mxu0 }
 0x144   :  { %1531 = vmatmul.mubr.msk.f32.gmra.mxu1 %vm371_vm3, %v341_v28 }
 0x145   :  { %v343_v18 = vpop.f32.mrf.mxu0  ;;  %1533 = vmatprep.mubr.msk.f32.mxu1 %vm1632_vm2, %v1631_v0 }
 0x147   :  { %v346_v19 = vpop.f32.mrf.mxu0 }
 0x148   :  { %1534 = vmatmul.mubr.msk.f32.gmra.mxu1 %vm371_vm3, %v346_v19 }
 0x149   :  { %v348_v20 = vpop.f32.mrf.mxu0  ;;  %1536 = vmatprep.mubr.msk.f32.mxu1 %vm1632_vm2, %v1631_v0 }
 0x14b   :  { %v351_v21 = vpop.f32.mrf.mxu0 }
 0x14c   :  { %1537 = vmatmul.mubr.msk.f32.gmra.mxu1 %vm371_vm3, %v351_v21 }
 0x14d   :  { %v353_v22 = vpop.f32.mrf.mxu0  ;;  %1539 = vmatprep.mubr.msk.f32.mxu1 %vm1632_vm2, %v1631_v0 }
 0x14f   :  { %v356_v23 = vpop.f32.mrf.mxu0 }
 0x150   :  { %1540 = vmatmul.mubr.msk.f32.gmra.mxu1 %vm371_vm3, %v356_v23 }
 0x151   :  { %v358_v24 = vpop.f32.mrf.mxu0  ;;  %1542 = vmatprep.mubr.msk.f32.mxu1 %vm1632_vm2, %v1631_v0 }
 0x153   :  { %v361_v25 = vpop.f32.mrf.mxu0 }
 0x154   :  { %1543 = vmatmul.mubr.msk.f32.gmra.mxu1 %vm371_vm3, %v361_v25 }
 0x155   :  { %v363_v26 = vpop.f32.mrf.mxu0  ;;  %1361 = vmatprep.mubr.msk.f32.mxu1 %vm95_vm0, %v1686_v7  ;;  %v2362_v7 = vld [vmem:[%s2717_s3] ss:$0 sm:$0xff] }
 0x158   :  { %761 = vmatmul.mubr.f32.vlgmr.msra.gmra.mxu1 %v1785_v29 }
 0x159   :  { %1362 = vmatprep.mubr.msk.f32.mxu1 %vm95_vm0, %v1791_v30  ;;  %1626 = vmatpush3.msk.msra.mxu1 %vm171_vm1, %v1725_v16 }
 0x15a   :  { %1625 = vmatprep.subr.mxu1 %v1631_v0 }
 0x15b   :  { %1627 = vmatpush3.msra.mxu1 %v1730_v17 }
 0x15c   :  { %766 = vmatmul.mubr.f32.gmra.mxu1 %v1800_v31 }
 0x15d   :  { %1363 = vmatprep.mubr.msk.f32.mxu1 %vm95_vm0, %v1807_v32 }
 0x160   :  { %771 = vmatmul.mubr.f32.gmra.mxu1 %v1817_v33 }
 0x161   :  { %1364 = vmatprep.mubr.msk.f32.mxu1 %vm95_vm0, %v1822_v34 }
 0x164   :  { %776 = vmatmul.mubr.f32.gmra.mxu1 %v1830_v35 }
 0x165   :  { %1365 = vmatprep.mubr.msk.f32.mxu1 %vm95_vm0, %v1835_v36 }
 0x168   :  { %781 = vmatmul.mubr.f32.gmra.mxu1 %v1843_v37 }
 0x169   :  { %1366 = vmatprep.mubr.msk.f32.mxu1 %vm95_vm0, %v1848_v38 }
 0x16c   :  { %786 = vmatmul.mubr.f32.gmra.mxu1 %v1856_v39 }
 0x16d   :  { %1367 = vmatprep.mubr.msk.f32.mxu1 %vm95_vm0, %v1861_v40 }
 0x170   :  { %791 = vmatmul.mubr.f32.gmra.mxu1 %v1869_v41 }
 0x171   :  { %1368 = vmatprep.mubr.msk.f32.mxu1 %vm95_vm0, %v1874_v42 }
 0x174   :  { %796 = vmatmul.mubr.f32.gmra.mxu1 %v1882_v43 }
 0x175   :  { %1369 = vmatprep.mubr.msk.f32.mxu1 %vm95_vm0, %v1887_v44 }
 0x178   :  { %801 = vmatmul.mubr.f32.gmra.mxu1 %v1895_v45 }
 0x179   :  { %1370 = vmatprep.mubr.msk.f32.mxu1 %vm95_vm0, %v1900_v46 }
 0x17c   :  { %806 = vmatmul.mubr.f32.gmra.mxu1 %v1908_v47 }
 0x17d   :  { %1371 = vmatprep.mubr.msk.f32.mxu1 %vm95_vm0, %v1913_v48 }
 0x180   :  { %811 = vmatmul.mubr.f32.gmra.mxu1 %v1921_v49 }
 0x181   :  { %1372 = vmatprep.mubr.msk.f32.mxu1 %vm95_vm0, %v1926_v50 }
 0x184   :  { %816 = vmatmul.mubr.f32.gmra.mxu1 %v1934_v51 }
 0x185   :  { %1373 = vmatprep.mubr.msk.f32.mxu1 %vm95_vm0, %v1939_v52 }
 0x188   :  { %821 = vmatmul.mubr.f32.gmra.mxu1 %v1947_v53 }
 0x189   :  { %1374 = vmatprep.mubr.msk.f32.mxu1 %vm95_vm0, %v1952_v54 }
 0x18c   :  { %826 = vmatmul.mubr.f32.gmra.mxu1 %v1960_v55 }
 0x18d   :  { %1375 = vmatprep.mubr.msk.f32.mxu1 %vm95_vm0, %v1965_v56 }
 0x190   :  { %831 = vmatmul.mubr.f32.gmra.mxu1 %v1973_v57 }
 0x191   :  { %1376 = vmatprep.mubr.msk.f32.mxu1 %vm95_vm0, %v1978_v58 }
 0x194   :  { %836 = vmatmul.mubr.f32.gmra.mxu1 %v1986_v59 }
 0x195   :  { %1377 = vmatprep.mubr.msk.f32.mxu1 %vm95_vm0, %v1991_v60 }
 0x198   :  { %841 = vmatmul.mubr.f32.gmra.mxu1 %v1999_v61 }
 0x199   :  { %1378 = vmatprep.mubr.msk.f32.mxu1 %vm95_vm0, %v2004_v62 }
 0x19c   :  { %846 = vmatmul.mubr.f32.gmra.mxu1 %v2014_v63 }
 0x19d   :  { %1379 = vmatprep.mubr.msk.f32.mxu1 %vm95_vm0, %v2019_v1 }
 0x1a0   :  { %851 = vmatmul.mubr.f32.gmra.mxu1 %v2027_v2 }
 0x1a1   :  { %1380 = vmatprep.mubr.msk.f32.mxu1 %vm95_vm0, %v2032_v3 }
 0x1a4   :  { %856 = vmatmul.mubr.f32.gmra.mxu1 %v2040_v4 }
 0x1a5   :  { %1381 = vmatprep.mubr.msk.f32.mxu1 %vm95_vm0, %v2045_v5 }
 0x1a8   :  { %861 = vmatmul.mubr.f32.gmra.mxu1 %v2053_v6 }
 0x1a9   :  { %1382 = vmatprep.mubr.msk.f32.mxu1 %vm95_vm0, %v2058_v8 }
 0x1ac   :  { %866 = vmatmul.mubr.f32.gmra.mxu1 %v2066_v9 }
 0x1ad   :  { %1383 = vmatprep.mubr.msk.f32.mxu1 %vm95_vm0, %v2071_v10 }
 0x1b0   :  { %871 = vmatmul.mubr.f32.gmra.mxu1 %v2079_v11 }
 0x1b1   :  { %1384 = vmatprep.mubr.msk.f32.mxu1 %vm95_vm0, %v2084_v12 }
 0x1b4   :  { %v516_v16 = vpop.f32.mrf.mxu1  ;;  %876 = vmatmul.mubr.f32.gmra.mxu1 %v2092_v13 }
 0x1b5   :  { %v517_v17 = vadd.f32 %v2362_v7, %v516_v16  ;;  %1385 = vmatprep.mubr.msk.f32.mxu1 %vm95_vm0, %v2097_v14 }
 0x1b6   :  { %v1472_v29 = vpop.f32.mrf.mxu1 }
 0x1b7   :  { %641 = vst.msk [vmem:[%s2718_s4] sm:$0xff] %vm640_vm4, %v517_v17 }
 0x1b8   :  { %v521_v30 = vpop.f32.mrf.mxu1  ;;  %881 = vmatmul.mubr.f32.gmra.mxu1 %v2105_v15 }
 0x1b9   :  { %v522_v31 = vadd.f32 %v2362_v7, %v521_v30  ;;  %1609 = vmatprep.mubr.msk.f32.mxu1 %vm1632_vm2, %v1631_v0 }
 0x1ba   :  { %v1475_v32 = vpop.f32.mrf.mxu1 }
 0x1bb   :  { %642 = vst.msk [vmem:[%s2718_s4 + $0x8] sm:$0xff] %vm640_vm4, %v522_v31 }
 0x1bc   :  { %v526_v33 = vpop.f32.mrf.mxu1 }
 0x1bd   :  { %v527_v34 = vadd.f32 %v2362_v7, %v526_v33 }
 0x1be   :  { %v1478_v35 = vpop.f32.mrf.mxu1 }
 0x1bf   :  { %643 = vst.msk [vmem:[%s2718_s4 + $0x10] sm:$0xff] %vm640_vm4, %v527_v34 }
 0x1c0   :  { %v531_v36 = vpop.f32.mrf.mxu1 }
 0x1c1   :  { %v532_v37 = vadd.f32 %v2362_v7, %v531_v36 }
 0x1c2   :  { %v1481_v38 = vpop.f32.mrf.mxu1 }
 0x1c3   :  { %644 = vst.msk [vmem:[%s2718_s4 + $0x18] sm:$0xff] %vm640_vm4, %v532_v37 }
 0x1c4   :  { %v536_v39 = vpop.f32.mrf.mxu1 }
 0x1c5   :  { %v537_v40 = vadd.f32 %v2362_v7, %v536_v39 }
 0x1c6   :  { %v1484_v41 = vpop.f32.mrf.mxu1 }
 0x1c7   :  { %645 = vst.msk [vmem:[%s2718_s4 + $0x20] sm:$0xff] %vm640_vm4, %v537_v40 }
 0x1c8   :  { %v541_v42 = vpop.f32.mrf.mxu1 }
 0x1c9   :  { %v542_v43 = vadd.f32 %v2362_v7, %v541_v42 }
 0x1ca   :  { %v1487_v44 = vpop.f32.mrf.mxu1 }
 0x1cb   :  { %646 = vst.msk [vmem:[%s2718_s4 + $0x28] sm:$0xff] %vm640_vm4, %v542_v43 }
 0x1cc   :  { %v546_v45 = vpop.f32.mrf.mxu1 }
 0x1cd   :  { %v547_v46 = vadd.f32 %v2362_v7, %v546_v45 }
 0x1ce   :  { %v1490_v47 = vpop.f32.mrf.mxu1 }
 0x1cf   :  { %647 = vst.msk [vmem:[%s2718_s4 + $0x30] sm:$0xff] %vm640_vm4, %v547_v46 }
 0x1d0   :  { %v551_v48 = vpop.f32.mrf.mxu1 }
 0x1d1   :  { %v552_v49 = vadd.f32 %v2362_v7, %v551_v48 }
 0x1d2   :  { %v1493_v50 = vpop.f32.mrf.mxu1 }
 0x1d3   :  { %648 = vst.msk [vmem:[%s2718_s4 + $0x38] sm:$0xff] %vm640_vm4, %v552_v49 }
 0x1d4   :  { %v556_v51 = vpop.f32.mrf.mxu1 }
 0x1d5   :  { %v557_v52 = vadd.f32 %v2362_v7, %v556_v51 }
 0x1d6   :  { %v1496_v53 = vpop.f32.mrf.mxu1 }
 0x1d7   :  { %649 = vst.msk [vmem:[%s2718_s4 + $0x40] sm:$0xff] %vm640_vm4, %v557_v52 }
 0x1d8   :  { %v561_v54 = vpop.f32.mrf.mxu1 }
 0x1d9   :  { %v562_v55 = vadd.f32 %v2362_v7, %v561_v54 }
 0x1da   :  { %v1499_v56 = vpop.f32.mrf.mxu1 }
 0x1db   :  { %650 = vst.msk [vmem:[%s2718_s4 + $0x48] sm:$0xff] %vm640_vm4, %v562_v55 }
 0x1dc   :  { %v566_v57 = vpop.f32.mrf.mxu1 }
 0x1dd   :  { %v567_v58 = vadd.f32 %v2362_v7, %v566_v57 }
 0x1de   :  { %v1502_v59 = vpop.f32.mrf.mxu1 }
 0x1df   :  { %651 = vst.msk [vmem:[%s2718_s4 + $0x50] sm:$0xff] %vm640_vm4, %v567_v58 }
 0x1e0   :  { %v571_v60 = vpop.f32.mrf.mxu1 }
 0x1e1   :  { %v572_v61 = vadd.f32 %v2362_v7, %v571_v60 }
 0x1e2   :  { %v1505_v62 = vpop.f32.mrf.mxu1 }
 0x1e3   :  { %652 = vst.msk [vmem:[%s2718_s4 + $0x58] sm:$0xff] %vm640_vm4, %v572_v61 }
 0x1e4   :  { %v576_v63 = vpop.f32.mrf.mxu1 }
 0x1e5   :  { %v577_v1 = vadd.f32 %v2362_v7, %v576_v63 }
 0x1e6   :  { %v1508_v2 = vpop.f32.mrf.mxu1 }
 0x1e7   :  { %653 = vst.msk [vmem:[%s2718_s4 + $0x60] sm:$0xff] %vm640_vm4, %v577_v1 }
 0x1e8   :  { %v581_v3 = vpop.f32.mrf.mxu1 }
 0x1e9   :  { %v582_v4 = vadd.f32 %v2362_v7, %v581_v3 }
 0x1ea   :  { %v1511_v5 = vpop.f32.mrf.mxu1 }
 0x1eb   :  { %654 = vst.msk [vmem:[%s2718_s4 + $0x68] sm:$0xff] %vm640_vm4, %v582_v4 }
 0x1ec   :  { %v586_v6 = vpop.f32.mrf.mxu1 }
 0x1ed   :  { %v587_v8 = vadd.f32 %v2362_v7, %v586_v6 }
 0x1ee   :  { %v1514_v9 = vpop.f32.mrf.mxu1 }
 0x1ef   :  { %655 = vst.msk [vmem:[%s2718_s4 + $0x70] sm:$0xff] %vm640_vm4, %v587_v8 }
 0x1f0   :  { %v591_v10 = vpop.f32.mrf.mxu1 }
 0x1f1   :  { %v592_v11 = vadd.f32 %v2362_v7, %v591_v10 }
 0x1f2   :  { %v1517_v12 = vpop.f32.mrf.mxu1 }
 0x1f3   :  { %656 = vst.msk [vmem:[%s2718_s4 + $0x78] sm:$0xff] %vm640_vm4, %v592_v11 }
 0x1f4   :  { %v596_v13 = vpop.f32.mrf.mxu1 }
 0x1f5   :  { %v597_v14 = vadd.f32 %v2362_v7, %v596_v13 }
 0x1f6   :  { %v1520_v15 = vpop.f32.mrf.mxu1 }
 0x1f7   :  { %657 = vst.msk [vmem:[%s2718_s4 + $0x80] sm:$0xff] %vm640_vm4, %v597_v14 }
 0x1f8   :  { %v601_v27 = vpop.f32.mrf.mxu1 }
 0x1f9   :  { %v602_v28 = vadd.f32 %v2362_v7, %v601_v27 }
 0x1fa   :  { %v1523_v18 = vpop.f32.mrf.mxu1 }
 0x1fb   :  { %658 = vst.msk [vmem:[%s2718_s4 + $0x88] sm:$0xff] %vm640_vm4, %v602_v28 }
 0x1fc   :  { %v606_v19 = vpop.f32.mrf.mxu1 }
 0x1fd   :  { %v607_v20 = vadd.f32 %v2362_v7, %v606_v19 }
 0x1fe   :  { %v1526_v21 = vpop.f32.mrf.mxu1 }
 0x1ff   :  { %659 = vst.msk [vmem:[%s2718_s4 + $0x90] sm:$0xff] %vm640_vm4, %v607_v20 }
 0x200   :  { %v611_v22 = vpop.f32.mrf.mxu1 }
 0x201   :  { %v612_v23 = vadd.f32 %v2362_v7, %v611_v22 }
 0x202   :  { %v1529_v24 = vpop.f32.mrf.mxu1 }
 0x203   :  { %660 = vst.msk [vmem:[%s2718_s4 + $0x98] sm:$0xff] %vm640_vm4, %v612_v23 }
 0x204   :  { %v616_v25 = vpop.f32.mrf.mxu1 }
 0x205   :  { %v617_v26 = vadd.f32 %v2362_v7, %v616_v25 }
 0x206   :  { %v1532_v16 = vpop.f32.mrf.mxu1 }
 0x207   :  { %661 = vst.msk [vmem:[%s2718_s4 + $0xa0] sm:$0xff] %vm640_vm4, %v617_v26 }
 0x208   :  { %v621_v17 = vpop.f32.mrf.mxu1 }
 0x209   :  { %v622_v29 = vadd.f32 %v2362_v7, %v621_v17 }
 0x20a   :  { %v1535_v30 = vpop.f32.mrf.mxu1 }
 0x20b   :  { %662 = vst.msk [vmem:[%s2718_s4 + $0xa8] sm:$0xff] %vm640_vm4, %v622_v29 }
 0x20c   :  { %v626_v31 = vpop.f32.mrf.mxu1 }
 0x20d   :  { %v627_v32 = vadd.f32 %v2362_v7, %v626_v31 }
 0x20e   :  { %v1538_v33 = vpop.f32.mrf.mxu1 }
 0x20f   :  { %663 = vst.msk [vmem:[%s2718_s4 + $0xb0] sm:$0xff] %vm640_vm4, %v627_v32 }
 0x210   :  { %v631_v34 = vpop.f32.mrf.mxu1 }
 0x211   :  { %v632_v35 = vadd.f32 %v2362_v7, %v631_v34 }
 0x212   :  { %v1541_v36 = vpop.f32.mrf.mxu1 }
 0x213   :  { %664 = vst.msk [vmem:[%s2718_s4 + $0xb8] sm:$0xff] %vm640_vm4, %v632_v35 }
 0x214   :  { %v636_v37 = vpop.f32.mrf.mxu1 }
 0x215   :  { %v637_v38 = vadd.f32 %v2362_v7, %v636_v37 }
 0x216   :  { %v1544_v39 = vpop.f32.mrf.mxu1 }
 0x217   :  { %666 = vst.msk [vmem:[%s2718_s4 + $0xc0] sm:$0xf] %vm665_vm5, %v637_v38 }
 0x218   :  { %v762_v40 = vpop.f32.mrf.mxu1 }
 0x219   :  { %1550 = vmatmul.mubr.msk.f32.vlgmr.msra.gmra.mxu0 %vm371_vm3, %v762_v40 }
 0x21a   :  { %v764_v41 = vpop.f32.mrf.mxu1  ;;  %1552 = vmatprep.mubr.msk.f32.mxu0 %vm1632_vm2, %v1631_v0 }
 0x21c   :  { %v767_v42 = vpop.f32.mrf.mxu1 }
 0x21d   :  { %1553 = vmatmul.mubr.msk.f32.gmra.mxu0 %vm371_vm3, %v767_v42 }
 0x21e   :  { %v769_v43 = vpop.f32.mrf.mxu1  ;;  %1555 = vmatprep.mubr.msk.f32.mxu0 %vm1632_vm2, %v1631_v0 }
 0x220   :  { %v772_v44 = vpop.f32.mrf.mxu1 }
 0x221   :  { %1556 = vmatmul.mubr.msk.f32.gmra.mxu0 %vm371_vm3, %v772_v44 }
 0x222   :  { %v774_v45 = vpop.f32.mrf.mxu1  ;;  %1558 = vmatprep.mubr.msk.f32.mxu0 %vm1632_vm2, %v1631_v0 }
 0x224   :  { %v777_v46 = vpop.f32.mrf.mxu1 }
 0x225   :  { %1559 = vmatmul.mubr.msk.f32.gmra.mxu0 %vm371_vm3, %v777_v46 }
 0x226   :  { %v779_v47 = vpop.f32.mrf.mxu1  ;;  %1561 = vmatprep.mubr.msk.f32.mxu0 %vm1632_vm2, %v1631_v0 }
 0x228   :  { %v782_v48 = vpop.f32.mrf.mxu1 }
 0x229   :  { %1562 = vmatmul.mubr.msk.f32.gmra.mxu0 %vm371_vm3, %v782_v48 }
 0x22a   :  { %v784_v49 = vpop.f32.mrf.mxu1  ;;  %1564 = vmatprep.mubr.msk.f32.mxu0 %vm1632_vm2, %v1631_v0 }
 0x22c   :  { %v787_v50 = vpop.f32.mrf.mxu1 }
 0x22d   :  { %1565 = vmatmul.mubr.msk.f32.gmra.mxu0 %vm371_vm3, %v787_v50 }
 0x22e   :  { %v789_v51 = vpop.f32.mrf.mxu1  ;;  %1567 = vmatprep.mubr.msk.f32.mxu0 %vm1632_vm2, %v1631_v0 }
 0x230   :  { %v792_v52 = vpop.f32.mrf.mxu1 }
 0x231   :  { %1568 = vmatmul.mubr.msk.f32.gmra.mxu0 %vm371_vm3, %v792_v52 }
 0x232   :  { %v794_v53 = vpop.f32.mrf.mxu1  ;;  %1570 = vmatprep.mubr.msk.f32.mxu0 %vm1632_vm2, %v1631_v0 }
 0x234   :  { %v797_v54 = vpop.f32.mrf.mxu1 }
 0x235   :  { %1571 = vmatmul.mubr.msk.f32.gmra.mxu0 %vm371_vm3, %v797_v54 }
 0x236   :  { %v799_v55 = vpop.f32.mrf.mxu1  ;;  %1573 = vmatprep.mubr.msk.f32.mxu0 %vm1632_vm2, %v1631_v0 }
 0x238   :  { %v802_v56 = vpop.f32.mrf.mxu1 }
 0x239   :  { %1574 = vmatmul.mubr.msk.f32.gmra.mxu0 %vm371_vm3, %v802_v56 }
 0x23a   :  { %v804_v57 = vpop.f32.mrf.mxu1  ;;  %1576 = vmatprep.mubr.msk.f32.mxu0 %vm1632_vm2, %v1631_v0 }
 0x23c   :  { %v807_v58 = vpop.f32.mrf.mxu1 }
 0x23d   :  { %1577 = vmatmul.mubr.msk.f32.gmra.mxu0 %vm371_vm3, %v807_v58 }
 0x23e   :  { %v809_v59 = vpop.f32.mrf.mxu1  ;;  %1579 = vmatprep.mubr.msk.f32.mxu0 %vm1632_vm2, %v1631_v0 }
 0x240   :  { %v812_v60 = vpop.f32.mrf.mxu1 }
 0x241   :  { %1580 = vmatmul.mubr.msk.f32.gmra.mxu0 %vm371_vm3, %v812_v60 }
 0x242   :  { %v814_v61 = vpop.f32.mrf.mxu1  ;;  %1582 = vmatprep.mubr.msk.f32.mxu0 %vm1632_vm2, %v1631_v0 }
 0x244   :  { %v817_v62 = vpop.f32.mrf.mxu1 }
 0x245   :  { %1583 = vmatmul.mubr.msk.f32.gmra.mxu0 %vm371_vm3, %v817_v62 }
 0x246   :  { %v819_v63 = vpop.f32.mrf.mxu1  ;;  %1585 = vmatprep.mubr.msk.f32.mxu0 %vm1632_vm2, %v1631_v0 }
 0x248   :  { %v822_v1 = vpop.f32.mrf.mxu1 }
 0x249   :  { %1586 = vmatmul.mubr.msk.f32.gmra.mxu0 %vm371_vm3, %v822_v1 }
 0x24a   :  { %v824_v2 = vpop.f32.mrf.mxu1  ;;  %1588 = vmatprep.mubr.msk.f32.mxu0 %vm1632_vm2, %v1631_v0 }
 0x24c   :  { %v827_v3 = vpop.f32.mrf.mxu1 }
 0x24d   :  { %1589 = vmatmul.mubr.msk.f32.gmra.mxu0 %vm371_vm3, %v827_v3 }
 0x24e   :  { %v829_v4 = vpop.f32.mrf.mxu1  ;;  %1591 = vmatprep.mubr.msk.f32.mxu0 %vm1632_vm2, %v1631_v0 }
 0x250   :  { %v832_v5 = vpop.f32.mrf.mxu1 }
 0x251   :  { %1592 = vmatmul.mubr.msk.f32.gmra.mxu0 %vm371_vm3, %v832_v5 }
 0x252   :  { %v834_v6 = vpop.f32.mrf.mxu1  ;;  %1594 = vmatprep.mubr.msk.f32.mxu0 %vm1632_vm2, %v1631_v0 }
 0x254   :  { %v837_v8 = vpop.f32.mrf.mxu1 }
 0x255   :  { %1595 = vmatmul.mubr.msk.f32.gmra.mxu0 %vm371_vm3, %v837_v8 }
 0x256   :  { %v839_v9 = vpop.f32.mrf.mxu1  ;;  %1597 = vmatprep.mubr.msk.f32.mxu0 %vm1632_vm2, %v1631_v0 }
 0x258   :  { %v842_v10 = vpop.f32.mrf.mxu1 }
 0x259   :  { %1598 = vmatmul.mubr.msk.f32.gmra.mxu0 %vm371_vm3, %v842_v10 }
 0x25a   :  { %v844_v11 = vpop.f32.mrf.mxu1  ;;  %1600 = vmatprep.mubr.msk.f32.mxu0 %vm1632_vm2, %v1631_v0 }
 0x25c   :  { %v847_v12 = vpop.f32.mrf.mxu1 }
 0x25d   :  { %1601 = vmatmul.mubr.msk.f32.gmra.mxu0 %vm371_vm3, %v847_v12 }
 0x25e   :  { %v849_v13 = vpop.f32.mrf.mxu1  ;;  %1603 = vmatprep.mubr.msk.f32.mxu0 %vm1632_vm2, %v1631_v0 }
 0x260   :  { %v852_v14 = vpop.f32.mrf.mxu1 }
 0x261   :  { %1604 = vmatmul.mubr.msk.f32.gmra.mxu0 %vm371_vm3, %v852_v14 }
 0x262   :  { %v854_v15 = vpop.f32.mrf.mxu1  ;;  %1606 = vmatprep.mubr.msk.f32.mxu0 %vm1632_vm2, %v1631_v0 }
 0x264   :  { %v857_v27 = vpop.f32.mrf.mxu1 }
 0x265   :  { %1607 = vmatmul.mubr.msk.f32.gmra.mxu0 %vm371_vm3, %v857_v27 }
 0x266   :  { %v859_v28 = vpop.f32.mrf.mxu1 }
 0x268   :  { %v862_v18 = vpop.f32.mrf.mxu1 }
 0x269   :  { %1610 = vmatmul.mubr.msk.f32.vlgmr.msra.gmra.mxu1 %vm371_vm3, %v862_v18 }
 0x26a   :  { %v864_v19 = vpop.f32.mrf.mxu1  ;;  %1612 = vmatprep.mubr.msk.f32.mxu1 %vm1632_vm2, %v1631_v0 }
 0x26c   :  { %v867_v20 = vpop.f32.mrf.mxu1 }
 0x26d   :  { %1613 = vmatmul.mubr.msk.f32.gmra.mxu1 %vm371_vm3, %v867_v20 }
 0x26e   :  { %v869_v21 = vpop.f32.mrf.mxu1  ;;  %1615 = vmatprep.mubr.msk.f32.mxu1 %vm1632_vm2, %v1631_v0 }
 0x270   :  { %v872_v22 = vpop.f32.mrf.mxu1 }
 0x271   :  { %1616 = vmatmul.mubr.msk.f32.gmra.mxu1 %vm371_vm3, %v872_v22 }
 0x272   :  { %v874_v23 = vpop.f32.mrf.mxu1  ;;  %1618 = vmatprep.mubr.msk.f32.mxu1 %vm1632_vm2, %v1631_v0 }
 0x274   :  { %v877_v24 = vpop.f32.mrf.mxu1 }
 0x275   :  { %1619 = vmatmul.mubr.msk.f32.gmra.mxu1 %vm371_vm3, %v877_v24 }
 0x276   :  { %v879_v25 = vpop.f32.mrf.mxu1  ;;  %1621 = vmatprep.mubr.msk.f32.mxu1 %vm1632_vm2, %v1631_v0 }
 0x278   :  { %v882_v26 = vpop.f32.mrf.mxu1 }
 0x279   :  { %1622 = vmatmul.mubr.msk.f32.gmra.mxu1 %vm371_vm3, %v882_v26 }
 0x27a   :  { %v884_v16 = vpop.f32.mrf.mxu1 }
 0x2d9   :  { %v1027_v17 = vpop.f32.mrf.mxu0 }
 0x2da   :  { %v1028_v29 = vadd.f32 %v2362_v7, %v1027_v17 }
 0x2db   :  { %v1551_v30 = vpop.f32.mrf.mxu0 }
 0x2dc   :  { %1176 = vrot.lane.b32.xlu0 %v1028_v29, %s1633_s21 }
 0x2dd   :  { %v1032_v31 = vpop.f32.mrf.mxu0 }
 0x2de   :  { %v1033_v32 = vadd.f32 %v2362_v7, %v1032_v31 }
 0x2df   :  { %v1554_v33 = vpop.f32.mrf.mxu0 }
 0x2e0   :  { %1178 = vrot.lane.b32.xlu0 %v1033_v32, %s1633_s21 }
 0x2e1   :  { %v1037_v34 = vpop.f32.mrf.mxu0 }
 0x2e2   :  { %v1038_v0 = vadd.f32 %v2362_v7, %v1037_v34 }
 0x2e3   :  { %v1557_v35 = vpop.f32.mrf.mxu0 }
 0x2e4   :  { %1180 = vrot.lane.b32.xlu1 %v1038_v0, %s1633_s21 }
 0x2e5   :  { %v1042_v36 = vpop.f32.mrf.mxu0 }
 0x2e6   :  { %v1043_v37 = vadd.f32 %v2362_v7, %v1042_v36 }
 0x2e7   :  { %v1560_v38 = vpop.f32.mrf.mxu0 }
 0x2e8   :  { %1182 = vrot.lane.b32.xlu1 %v1043_v37, %s1633_s21 }
 0x2e9   :  { %v1047_v39 = vpop.f32.mrf.mxu0 }
 0x2ea   :  { %v1048_v40 = vadd.f32 %v2362_v7, %v1047_v39 }
 0x2eb   :  { %v1563_v41 = vpop.f32.mrf.mxu0 }
 0x2ec   :  { %1184 = vrot.lane.b32.xlu0 %v1048_v40, %s1633_s21 }
 0x2ed   :  { %v1052_v42 = vpop.f32.mrf.mxu0 }
 0x2ee   :  { %v1053_v43 = vadd.f32 %v2362_v7, %v1052_v42 }
 0x2ef   :  { %v1566_v44 = vpop.f32.mrf.mxu0 }
 0x2f0   :  { %1186 = vrot.lane.b32.xlu1 %v1053_v43, %s1633_s21 }
 0x2f1   :  { %v1057_v45 = vpop.f32.mrf.mxu0 }
 0x2f2   :  { %v1058_v46 = vadd.f32 %v2362_v7, %v1057_v45 }
 0x2f3   :  { %v1569_v47 = vpop.f32.mrf.mxu0 }
 0x2f4   :  { %1188 = vrot.lane.b32.xlu0 %v1058_v46, %s1633_s21 }
 0x2f5   :  { %v1062_v48 = vpop.f32.mrf.mxu0 }
 0x2f6   :  { %v1063_v49 = vadd.f32 %v2362_v7, %v1062_v48 }
 0x2f7   :  { %v1572_v50 = vpop.f32.mrf.mxu0 }
 0x2f8   :  { %1190 = vrot.lane.b32.xlu1 %v1063_v49, %s1633_s21 }
 0x2f9   :  { %v1067_v51 = vpop.f32.mrf.mxu0 }
 0x2fa   :  { %v1068_v52 = vadd.f32 %v2362_v7, %v1067_v51 }
 0x2fb   :  { %v1575_v53 = vpop.f32.mrf.mxu0 }
 0x2fc   :  { %1192 = vrot.lane.b32.xlu0 %v1068_v52, %s1633_s21 }
 0x2fd   :  { %v1072_v54 = vpop.f32.mrf.mxu0 }
 0x2fe   :  { %v1073_v55 = vadd.f32 %v2362_v7, %v1072_v54 }
 0x2ff   :  { %v1578_v56 = vpop.f32.mrf.mxu0 }
 0x300   :  { %1194 = vrot.lane.b32.xlu1 %v1073_v55, %s1633_s21 }
 0x301   :  { %v1077_v57 = vpop.f32.mrf.mxu0 }
 0x302   :  { %v1078_v58 = vadd.f32 %v2362_v7, %v1077_v57 }
 0x303   :  { %v1581_v59 = vpop.f32.mrf.mxu0 }
 0x304   :  { %1196 = vrot.lane.b32.xlu0 %v1078_v58, %s1633_s21 }
 0x305   :  { %v1082_v60 = vpop.f32.mrf.mxu0 }
 0x306   :  { %v1083_v61 = vadd.f32 %v2362_v7, %v1082_v60 }
 0x307   :  { %v1584_v62 = vpop.f32.mrf.mxu0 }
 0x308   :  { %1198 = vrot.lane.b32.xlu1 %v1083_v61, %s1633_s21 }
 0x309   :  { %v1087_v63 = vpop.f32.mrf.mxu0 }
 0x30a   :  { %v1088_v1 = vadd.f32 %v2362_v7, %v1087_v63 }
 0x30b   :  { %v1587_v2 = vpop.f32.mrf.mxu0 }
 0x30c   :  { %1200 = vrot.lane.b32.xlu0 %v1088_v1, %s1633_s21 }
 0x30d   :  { %v1092_v3 = vpop.f32.mrf.mxu0 }
 0x30e   :  { %v1093_v4 = vadd.f32 %v2362_v7, %v1092_v3 }
 0x30f   :  { %v1590_v5 = vpop.f32.mrf.mxu0 }
 0x310   :  { %1202 = vrot.lane.b32.xlu1 %v1093_v4, %s1633_s21 }
 0x311   :  { %v1097_v6 = vpop.f32.mrf.mxu0 }
 0x312   :  { %v1098_v8 = vadd.f32 %v2362_v7, %v1097_v6 }
 0x313   :  { %v1593_v9 = vpop.f32.mrf.mxu0 }
 0x314   :  { %1204 = vrot.lane.b32.xlu0 %v1098_v8, %s1633_s21 }
 0x315   :  { %v1102_v10 = vpop.f32.mrf.mxu0 }
 0x316   :  { %v1103_v11 = vadd.f32 %v2362_v7, %v1102_v10 }
 0x317   :  { %v1596_v12 = vpop.f32.mrf.mxu0 }
 0x318   :  { %1206 = vrot.lane.b32.xlu1 %v1103_v11, %s1633_s21 }
 0x319   :  { %v1107_v13 = vpop.f32.mrf.mxu0 }
 0x31a   :  { %v1108_v14 = vadd.f32 %v2362_v7, %v1107_v13 }
 0x31b   :  { %v1599_v15 = vpop.f32.mrf.mxu0 }
 0x31c   :  { %1208 = vrot.lane.b32.xlu0 %v1108_v14, %s1633_s21 }
 0x31d   :  { %v1112_v27 = vpop.f32.mrf.mxu0 }
 0x31e   :  { %v1113_v28 = vadd.f32 %v2362_v7, %v1112_v27 }
 0x31f   :  { %v1602_v18 = vpop.f32.mrf.mxu0 }
 0x320   :  { %1210 = vrot.lane.b32.xlu1 %v1113_v28, %s1633_s21 }
 0x321   :  { %v1117_v19 = vpop.f32.mrf.mxu0 }
 0x322   :  { %v1118_v20 = vadd.f32 %v2362_v7, %v1117_v19 }
 0x323   :  { %v1605_v21 = vpop.f32.mrf.mxu0 }
 0x324   :  { %1212 = vrot.lane.b32.xlu0 %v1118_v20, %s1633_s21 }
 0x325   :  { %v1122_v22 = vpop.f32.mrf.mxu0 }
 0x326   :  { %v1123_v23 = vadd.f32 %v2362_v7, %v1122_v22 }
 0x327   :  { %v1608_v24 = vpop.f32.mrf.mxu0 }
 0x328   :  { %1214 = vrot.lane.b32.xlu1 %v1123_v23, %s1633_s21 }
 0x329   :  { %v1127_v25 = vpop.f32.mrf.mxu1 }
 0x32a   :  { %v1128_v26 = vadd.f32 %v2362_v7, %v1127_v25 }
 0x32b   :  { %v1611_v16 = vpop.f32.mrf.mxu1 }
 0x32c   :  { %1216 = vrot.lane.b32.xlu0 %v1128_v26, %s1633_s21 }
 0x32d   :  { %v1132_v17 = vpop.f32.mrf.mxu1 }
 0x32e   :  { %v1133_v29 = vadd.f32 %v2362_v7, %v1132_v17 }
 0x32f   :  { %v1614_v30 = vpop.f32.mrf.mxu1 }
 0x330   :  { %1218 = vrot.lane.b32.xlu1 %v1133_v29, %s1633_s21 }
 0x331   :  { %v1137_v31 = vpop.f32.mrf.mxu1 }
 0x332   :  { %v1138_v32 = vadd.f32 %v2362_v7, %v1137_v31 }
 0x333   :  { %v1617_v33 = vpop.f32.mrf.mxu1 }
 0x334   :  { %1220 = vrot.lane.b32.xlu0 %v1138_v32, %s1633_s21 }
 0x335   :  { %v1142_v34 = vpop.f32.mrf.mxu1 }
 0x336   :  { %v1143_v0 = vadd.f32 %v2362_v7, %v1142_v34 }
 0x337   :  { %v1620_v35 = vpop.f32.mrf.mxu1 }
 0x338   :  { %1222 = vrot.lane.b32.xlu1 %v1143_v0, %s1633_s21 }
 0x339   :  { %v1147_v36 = vpop.f32.mrf.mxu1 }
 0x33a   :  { %v1148_v37 = vadd.f32 %v2362_v7, %v1147_v36 }
 0x33b   :  { %v1623_v38 = vpop.f32.mrf.mxu1 }
 0x33c   :  { %1224 = vrot.lane.b32.xlu0 %v1148_v37, %s1633_s21 }
 0x34e   :  { %v1177_v39 = vpop.permute.xlu0 %1176 }
 0x34f   :  { %1252 = vst.msk [vmem:[%s2718_s4] sm:$0xff] %vm1251_vm6, %v1177_v39 }
 0x352   :  { %v1179_v40 = vpop.permute.xlu0 %1178 }
 0x353   :  { %1253 = vst.msk [vmem:[%s2718_s4 + $0x8] sm:$0xff] %vm1251_vm6, %v1179_v40 }
 0x356   :  { %v1181_v41 = vpop.permute.xlu1 %1180 }
 0x357   :  { %1254 = vst.msk [vmem:[%s2718_s4 + $0x10] sm:$0xff] %vm1251_vm6, %v1181_v41 }
 0x35a   :  { %v1183_v7 = vpop.permute.xlu1 %1182 }
 0x35b   :  { %1255 = vst.msk [vmem:[%s2718_s4 + $0x18] sm:$0xff] %vm1251_vm6, %v1183_v7 }
 0x35e   :  { %v1185_v42 = vpop.permute.xlu0 %1184 }
 0x35f   :  { %1256 = vst.msk [vmem:[%s2718_s4 + $0x20] sm:$0xff] %vm1251_vm6, %v1185_v42 }
 0x362   :  { %v1187_v43 = vpop.permute.xlu1 %1186 }
 0x363   :  { %1257 = vst.msk [vmem:[%s2718_s4 + $0x28] sm:$0xff] %vm1251_vm6, %v1187_v43 }
 0x366   :  { %v1189_v44 = vpop.permute.xlu0 %1188 }
 0x367   :  { %1258 = vst.msk [vmem:[%s2718_s4 + $0x30] sm:$0xff] %vm1251_vm6, %v1189_v44 }
 0x36a   :  { %v1191_v45 = vpop.permute.xlu1 %1190 }
 0x36b   :  { %1259 = vst.msk [vmem:[%s2718_s4 + $0x38] sm:$0xff] %vm1251_vm6, %v1191_v45 }
 0x36e   :  { %v1193_v46 = vpop.permute.xlu0 %1192 }
 0x36f   :  { %1260 = vst.msk [vmem:[%s2718_s4 + $0x40] sm:$0xff] %vm1251_vm6, %v1193_v46 }
 0x372   :  { %v1195_v47 = vpop.permute.xlu1 %1194 }
 0x373   :  { %1261 = vst.msk [vmem:[%s2718_s4 + $0x48] sm:$0xff] %vm1251_vm6, %v1195_v47 }
 0x376   :  { %v1197_v48 = vpop.permute.xlu0 %1196 }
 0x377   :  { %1262 = vst.msk [vmem:[%s2718_s4 + $0x50] sm:$0xff] %vm1251_vm6, %v1197_v48 }
 0x37a   :  { %v1199_v49 = vpop.permute.xlu1 %1198 }
 0x37b   :  { %1263 = vst.msk [vmem:[%s2718_s4 + $0x58] sm:$0xff] %vm1251_vm6, %v1199_v49 }
 0x37e   :  { %v1201_v50 = vpop.permute.xlu0 %1200 }
 0x37f   :  { %1264 = vst.msk [vmem:[%s2718_s4 + $0x60] sm:$0xff] %vm1251_vm6, %v1201_v50 }
 0x382   :  { %v1203_v51 = vpop.permute.xlu1 %1202 }
 0x383   :  { %1265 = vst.msk [vmem:[%s2718_s4 + $0x68] sm:$0xff] %vm1251_vm6, %v1203_v51 }
 0x386   :  { %v1205_v52 = vpop.permute.xlu0 %1204 }
 0x387   :  { %1266 = vst.msk [vmem:[%s2718_s4 + $0x70] sm:$0xff] %vm1251_vm6, %v1205_v52 }
 0x38a   :  { %v1207_v53 = vpop.permute.xlu1 %1206 }
 0x38b   :  { %1267 = vst.msk [vmem:[%s2718_s4 + $0x78] sm:$0xff] %vm1251_vm6, %v1207_v53 }
 0x38e   :  { %v1209_v54 = vpop.permute.xlu0 %1208 }
 0x38f   :  { %1268 = vst.msk [vmem:[%s2718_s4 + $0x80] sm:$0xff] %vm1251_vm6, %v1209_v54 }
 0x392   :  { %v1211_v55 = vpop.permute.xlu1 %1210 }
 0x393   :  { %1269 = vst.msk [vmem:[%s2718_s4 + $0x88] sm:$0xff] %vm1251_vm6, %v1211_v55 }
 0x396   :  { %v1213_v56 = vpop.permute.xlu0 %1212 }
 0x397   :  { %1270 = vst.msk [vmem:[%s2718_s4 + $0x90] sm:$0xff] %vm1251_vm6, %v1213_v56 }
 0x39a   :  { %v1215_v57 = vpop.permute.xlu1 %1214 }
 0x39b   :  { %1271 = vst.msk [vmem:[%s2718_s4 + $0x98] sm:$0xff] %vm1251_vm6, %v1215_v57 }
 0x39e   :  { %v1217_v58 = vpop.permute.xlu0 %1216 }
 0x39f   :  { %1272 = vst.msk [vmem:[%s2718_s4 + $0xa0] sm:$0xff] %vm1251_vm6, %v1217_v58 }
 0x3a2   :  { %v1219_v59 = vpop.permute.xlu1 %1218 }
 0x3a3   :  { %1273 = vst.msk [vmem:[%s2718_s4 + $0xa8] sm:$0xff] %vm1251_vm6, %v1219_v59 }
 0x3a6   :  { %v1221_v60 = vpop.permute.xlu0 %1220 }
 0x3a7   :  { %1274 = vst.msk [vmem:[%s2718_s4 + $0xb0] sm:$0xff] %vm1251_vm6, %v1221_v60 }
 0x3aa   :  { %v1223_v61 = vpop.permute.xlu1 %1222 }
 0x3ab   :  { %1275 = vst.msk [vmem:[%s2718_s4 + $0xb8] sm:$0xff] %vm1251_vm6, %v1223_v61 }
 0x3ae   :  { %v1225_v62 = vpop.permute.xlu0 %1224 }
 0x3af   :  { %1277 = vst.msk [vmem:[%s2718_s4 + $0xc0] sm:$0xf] %vm1276_vm7, %v1225_v62 }

</bundles_post_ra>
